<compile_context>
chip_gen: v6e
topology: v6e:2x2x1
jax: 0.10.0
libtpu: 0.0.40
codegen_flags: <defaults>
</compile_context>

<pallas_src>
import functools

import jax
import jax.numpy as jnp
from jax.experimental import pallas as pl
from jax.experimental.pallas import tpu as pltpu

# Candidate lane widths for the flattened 2-D slab (widest first).
_LANE_CANDIDATES = (4096, 2048, 1024, 512, 256, 128)
# ~1 MiB per block buffer: near HBM roofline on v5e/v6e/v7x, and
# 2 arrays x 2 pipeline buffers x 1 MiB = 4 MiB stays far under any VMEM limit.
_TARGET_BLOCK_BYTES = 1 << 20


def _maximum_threshold_kernel(x_ref, o_ref, *, threshold, value):
    x = x_ref[...]
    # y = x if x < threshold else value   (matches -F.threshold(-x, -t, -v))
    o_ref[...] = jnp.where(x < threshold, x, jnp.asarray(value, x.dtype))


def _run_2d(x2d, threshold, value):
    """Run the elementwise kernel over a lane-dense (rows, lanes) slab."""
    rows, lanes = x2d.shape
    itemsize = jnp.dtype(x2d.dtype).itemsize

    # Pick a row tile so the block is ~1 MiB (multiple of 8 sublanes).
    block_rows = max(8, (_TARGET_BLOCK_BYTES // (lanes * itemsize)) // 8 * 8)
    if block_rows >= rows:
        block_rows = rows  # full extent is always a legal block dim

    grid = (pl.cdiv(rows, block_rows),)  # ragged last block is masked by Pallas

    kernel = functools.partial(
        _maximum_threshold_kernel, threshold=threshold, value=value
    )

    return pl.pallas_call(
        kernel,
        out_shape=jax.ShapeDtypeStruct((rows, lanes), x2d.dtype),
        grid_spec=pltpu.PrefetchScalarGridSpec(
            num_scalar_prefetch=0,
            grid=grid,
            in_specs=[pl.BlockSpec((block_rows, lanes), lambda i: (i, 0))],
            out_specs=pl.BlockSpec((block_rows, lanes), lambda i: (i, 0)),
        ),
        compiler_params=pltpu.CompilerParams(
            dimension_semantics=("parallel",)
        ),
    )(x2d)


def maximum_threshold(x, threshold, value):
    """Applies MaximumThreshold elementwise via a Pallas TPU kernel."""
    orig_shape = x.shape
    n = x.size
    threshold = float(threshold)  # static module hyperparameters
    value = float(value)

    # Fast path: total element count divides a 128-multiple lane width
    # (typical for NCHW where C*H*W is 128-aligned) -> no pad, no slice,
    # just a metadata reshape into a lane-dense slab.
    lanes = None
    for w in _LANE_CANDIDATES:
        if n % w == 0:
            lanes = w
            break

    if lanes is not None:
        out2d = _run_2d(x.reshape(n // lanes, lanes), threshold, value)
        return out2d.reshape(orig_shape)

    # Fallback for sizes not 128-aligned: pad once to 128 lanes, slice back.
    # (Costs an extra HBM round trip, but only hit for odd total sizes.)
    lanes = 128
    n_pad = (-n) % lanes
    flat = jnp.concatenate([x.reshape(-1), jnp.zeros((n_pad,), dtype=x.dtype)])
    out2d = _run_2d(flat.reshape(-1, lanes), threshold, value)
    return out2d.reshape(-1)[:n].reshape(orig_shape)


def maximum_threshold_ref(x, threshold, value):
    # Pure-JAX reference of the PyTorch forward.
    neg = -1.0 * x
    thresholded = jnp.where(neg > -threshold, neg, jnp.asarray(-value, x.dtype))
    return (-1.0 * thresholded).astype(x.dtype)


if __name__ == "__main__":
    key = jax.random.PRNGKey(0)
    # Module is shape-agnostic (N, *); use a small NCHW-like input.
    x = jax.random.normal(key, (2, 4, 16, 16), dtype=jnp.float32)

    threshold = 0.1
    value = 20.0

    out = maximum_threshold(x, threshold, value)
    out = jax.block_until_ready(out)

    ref = maximum_threshold_ref(x, threshold, value)
    assert out.shape == x.shape and out.dtype == x.dtype
    assert jnp.allclose(out, ref), "mismatch vs reference"

    print("KERNEL_OK")
</pallas_src>

<mosaic_0001>
module attributes {stable_mosaic.version = 11 : i64} {
  func.func @_maximum_threshold_kernel(%arg0: i32, %arg1: memref<1x2048xf32, #tpu.memory_space<vmem>>, %arg2: memref<1x2048xf32, #tpu.memory_space<vmem>>) attributes {dimension_semantics = [#tpu.dimension_semantics<parallel>], iteration_bounds = array<i64: 1>, scalar_prefetch = 0 : i64, scratch_operands = 0 : i64, tpu.core_type = #tpu.core_type<tc>, window_params = [{transform_indices = @transform_0, window_bounds = array<i64: 1, 2048>}, {transform_indices = @transform_1, window_bounds = array<i64: 1, 2048>}]} {
    %c0 = arith.constant 0 : index
    %c0_0 = arith.constant 0 : index
    %0 = vector.load %arg1[%c0, %c0_0] : memref<1x2048xf32, #tpu.memory_space<vmem>>, vector<1x2048xf32>
    %cst = arith.constant 1.000000e-01 : f32
    %1 = vector.broadcast %cst : f32 to vector<1x2048xf32>
    %2 = arith.cmpf olt, %0, %1 : vector<1x2048xf32>
    %cst_1 = arith.constant 2.000000e+01 : f32
    %3 = vector.broadcast %cst_1 : f32 to vector<1x2048xf32>
    %4 = arith.select %2, %0, %3 : vector<1x2048xi1>, vector<1x2048xf32>
    %c0_2 = arith.constant 0 : index
    %c0_3 = arith.constant 0 : index
    %5 = vector.load %arg2[%c0_2, %c0_3] : memref<1x2048xf32, #tpu.memory_space<vmem>>, vector<1x2048xf32>
    tpu.vector_store %arg2[%c0_2, %c0_3], %4 {strides = array<i32>} : memref<1x2048xf32, #tpu.memory_space<vmem>>, vector<1x2048xf32>,
    return
  }
  func.func @transform_0(%arg0: i32) -> (i32, i32) {
    %c0_i32 = arith.constant 0 : i32
    %c0_i32_0 = arith.constant 0 : i32
    return %arg0, %c0_i32 : i32, i32
  }
  func.func @transform_1(%arg0: i32) -> (i32, i32) {
    %c0_i32 = arith.constant 0 : i32
    %c0_i32_0 = arith.constant 0 : i32
    return %arg0, %c0_i32 : i32, i32
  }
}

</mosaic_0001>

<bundles_post_ra>
// kernel: tpu_custom_call.1
= control target key start
LH: loop header
LB: loop body
LE: loop exit
PB: predicated region body
PF: predicated region fallthrough
CT: control target
= control target key end

     0   :  { %6 = vsyncpa [#allocation3], 0  ;;  %s108_s0 = inlined_call_operand.hbm [shape: f32[1,2048], index: 0, kind: input, shape index: {}]   ;;  %s109_s1 = inlined_call_operand.hbm [shape: f32[1,2048], index: 1, kind: output, shape index: {}]  }
   0x1   :  { %7 = vsyncpa [#allocation4], 0  ;;  %s90_s6 = smov [#allocation2]  }
   0x2   :  { %s14_s7 = sshll.u32 %s90_s6, 4  ;;  %s15_s7 = int_to_ptr.vmem [resolvable:$true] %s14_s7 }
   0x3   :  { %s54_s8 = scalar_lea.vmem %s15_s7, 256  ;;  %p59_p1 = scmp.lt.s32.totalorder %s15_s7, %s15_s7 }
   0x4   :  { %p55_p0 = scmp.ne.s32.totalorder %s15_s7, %s54_s8  ;;  %p60_p2 = scmp.lt.s32.totalorder %s54_s8, %s54_s8 }
   0x6   :  { %p61_p3 = por %p60_p2, %p59_p1 }
   0x8   :  { %p62_p4 = pnand %p61_p3, %p55_p0 }
   0xa   :  { %65 = shalt.err (!%p62_p4)
}
   0xb   :  { %17 = dma.hbm_to_vmem [thread:$0]  %s108_s0, 256, %s15_s7, [#allocation3]  }
   0xc   :  { %86 = dma.done.wait [#allocation3], 256  }
   0xd   :  { %87 = vsyncadd [#allocation3], 4294967040  ;;  %s91_s11 = smov [#allocation5]   ;;  %v21_v0 = vld [vmem:[#allocation2] sm:$0xff]  ;;  %v22_v1 = vld [vmem:[#allocation2 + $0x8] sm:$0xff] }
   0xe   :  { %s35_s12 = sshll.u32 %s91_s11, 4  ;;  %vm23_vm0 = vcmp.lt.f32.partialorder %v21_v0, 0.1  ;;  %vm24_vm1 = vcmp.lt.f32.partialorder %v22_v1, 0.1  ;;  %s36_s12 = int_to_ptr.vmem [resolvable:$true] %s35_s12 }
   0xf   :  { %v25_v2 = vsel %vm23_vm0, %v21_v0, 20.0  ;;  %v26_v3 = vsel %vm24_vm1, %v22_v1, 20.0  ;;  %s66_s13 = scalar_lea.vmem %s36_s12, 256  ;;  %p71_p6 = scmp.lt.s32.totalorder %s36_s12, %s36_s12 }
  0x10   :  { %27 = vst [vmem:[#allocation5] sm:$0xff] %v25_v2  ;;  %28 = vst [vmem:[#allocation5 + $0x8] sm:$0xff] %v26_v3  ;;  %p67_p5 = scmp.ne.s32.totalorder %s36_s12, %s66_s13  ;;  %p72_p7 = scmp.lt.s32.totalorder %s66_s13, %s66_s13 }
  0x12   :  { %p73_p8 = por %p72_p7, %p71_p6 }
  0x14   :  { %p74_p9 = pnand %p73_p8, %p67_p5 }
  0x16   :  { %77 = shalt.err (!%p74_p9)
}
  0x17   :  { %38 = dma.vmem_to_hbm [thread:$0]  %s36_s12, 256, %s109_s1, [#allocation4]  }
  0x18   :  { %88 = dma.done.wait [#allocation4], 256  }
  0x19   :  { %89 = vsyncadd [#allocation4], 4294967040 }
  0x1a   :  { %42 = vsyncpa [#allocation3], 1 }
  0x1b   :  { %43 = vsyncpa [#allocation4], 1 }

</bundles_post_ra>
